<compile_context>
chip_gen: v6e
topology: v6e:2x2x1
jax: 0.10.0
libtpu: 0.0.40
codegen_flags: <defaults>
</compile_context>

<pallas_src>
import functools

import jax
import jax.numpy as jnp
import numpy as np
from jax.experimental import pallas as pl
from jax.experimental.pallas import tpu as pltpu


def _proxy_loss_kernel(feat_q_ref, feat_kv_ref, pred_ref, tcol_ref, trow_ref,
                       out_ref, qn_ref, m_ref, l_ref, picked_ref, *,
                       scale, thres, has_pad):
    j = pl.program_id(1)
    n_kv = pl.num_programs(1)
    neg_inf = jnp.float32(-jnp.inf)
    sthres = jnp.float32(scale * thres)

    # ---- per-q-tile init: cache scale-folded q rows, seed softmax from pred ----
    @pl.when(j == 0)
    def _():
        fq = feat_q_ref[...].astype(jnp.float32)          # already L2-normalized
        if scale != 1.0:
            fq = fq * jnp.float32(scale)                  # fold scale into q side
        qn_ref[...] = fq.astype(qn_ref.dtype)

        lp = jnp.float32(scale) * pred_ref[...].astype(jnp.float32)   # (TQ, C)
        m0 = jnp.max(lp, axis=1, keepdims=True)
        l0 = jnp.sum(jnp.exp(lp - m0), axis=1, keepdims=True)
        col = jax.lax.broadcasted_iota(jnp.int32, lp.shape, 1)
        # Assumes target[i] < C (class index into `pred`), matching nll_loss use.
        picked_ref[...] = jnp.sum(
            jnp.where(col == tcol_ref[...], lp, 0.0), axis=1, keepdims=True)
        m_ref[...] = m0
        l_ref[...] = l0

    # ---- kv tile: NT matmul on the MXU (f32 accumulation); output is scale*cos ----
    ls = jax.lax.dot_general(                              # (TQ, TKV)
        qn_ref[...], feat_kv_ref[...], (((1,), (1,)), ((), ())),
        preferred_element_type=jnp.float32)

    trow = trow_ref[pl.ds(j, 1), :]                        # (1, TKV), VMEM-resident
    label = tcol_ref[...] == trow                          # (TQ, TKV)
    if thres > 0.0:
        # Same-label entries are 0 in the reference and 0 < thres -> -inf, so a
        # single fused select is exactly equivalent (padded kv columns too).
        mask = (label | (trow < 0)) if has_pad else label
        ls = jnp.where(mask | (ls < sthres), neg_inf, ls)
    else:
        ls = jnp.where(label, 0.0, ls)
        kill = ((ls < sthres) | (trow < 0)) if has_pad else (ls < sthres)
        ls = jnp.where(kill, neg_inf, ls)

    # ---- online-softmax update ----
    m_prev = m_ref[...]
    m_new = jnp.maximum(m_prev, jnp.max(ls, axis=1, keepdims=True))  # finite: pred seeds m
    alpha = jnp.exp(m_prev - m_new)
    l_ref[...] = alpha * l_ref[...] + jnp.sum(jnp.exp(ls - m_new), axis=1,
                                              keepdims=True)
    m_ref[...] = m_new

    # ---- finalize this q tile: per-row NLL ----
    @pl.when(j == n_kv - 1)
    def _():
        out_ref[...] = m_ref[...] + jnp.log(l_ref[...]) - picked_ref[...]


def _choose_tiles(b_pad, d, mm_bytes):
    # Resident-K fast path: the whole normalized feature matrix stays in VMEM
    # (constant kv block index => Pallas fetches it from HBM exactly once).
    if b_pad * d * mm_bytes <= 8 * 1024 * 1024:
        tkv = b_pad
    else:
        tkv = next(t for t in (512, 256, 128) if b_pad % t == 0)
    # q tile: as large as possible (halves the kv HBM re-stream per doubling)
    # while keeping >=2 q tiles (v7x megacore) and modest (TQ,TKV) f32 temps.
    tq_cap = max(8, min(512, b_pad // 2))
    tq = next(t for t in (512, 256, 128, 64, 32, 16, 8)
              if t <= tq_cap and b_pad % t == 0)
    while tq > 8 and tq * tkv * 4 * 4 > 8 * 1024 * 1024:
        tq //= 2
    return tq, tkv


def _vmem_limit(b_pad, d, c, tq, tkv, n_kv, mm_bytes, pred_bytes, kv_bufs):
    blocks = 2 * tq * d * mm_bytes + kv_bufs * tkv * d * mm_bytes   # feature tiles
    blocks += 2 * tq * c * pred_bytes                               # pred tile
    blocks += 2 * (tq * 128 * 4) * 2                                # tcol + out (lane-padded)
    blocks += ((n_kv + 7) // 8) * 8 * tkv * 4                       # resident target rows
    scratch = tq * d * mm_bytes + 3 * tq * 128 * 4                  # qn, m, l, picked
    temps = 5 * tq * tkv * 4                                        # sim/mask/exp temporaries
    need = blocks + scratch + temps
    return int(min(max(need * 2 + (4 << 20), 16 << 20), 48 << 20))


def proxy_loss(feature, pred, target, *, scale=1.0, thres=0.1,
               matmul_dtype=None):
    """ProxyLoss forward.  feature: (B, D); pred: (B, C); target: (B,) int.

    Assumes target[i] < C (class indices into `pred`), matching the module's
    nll_loss usage.  scale must be > 0 (it is folded into the logits before
    the threshold masking)."""
    if scale <= 0:
        raise ValueError("proxy_loss requires scale > 0 (scale is folded into "
                         "the masked similarity logits).")
    B, D = feature.shape
    C = pred.shape[1]

    if matmul_dtype is None:
        matmul_dtype = jnp.bfloat16 if feature.dtype == jnp.float32 else feature.dtype
    mm_bytes = np.dtype(matmul_dtype).itemsize

    # Hoisted L2 normalization (== F.normalize(p=2, dim=1, eps=1e-12)); the
    # kernel never re-normalizes kv tiles, and matmul operands go to HBM in
    # the (narrow) matmul dtype.
    feat_n = feature / jnp.maximum(
        jnp.linalg.norm(feature.astype(jnp.float32), axis=1, keepdims=True), 1e-12)
    feat_n = feat_n.astype(matmul_dtype)

    # Pad B to a multiple of 128 so tq/tkv are always real (8,128)-aligned tiles.
    b_pad = ((B + 127) // 128) * 128
    pad = b_pad - B
    tgt = target.astype(jnp.int32)
    if pad:
        feat_n = jnp.pad(feat_n, ((0, pad), (0, 0)))
        pred_p = jnp.pad(pred, ((0, pad), (0, 0)))
        tgt = jnp.pad(tgt, ((0, pad),), constant_values=-1)   # -1 marks padded rows
    else:
        pred_p = pred

    tq, tkv = _choose_tiles(b_pad, D, mm_bytes)
    n_q, n_kv = b_pad // tq, b_pad // tkv

    tcol = tgt.reshape(b_pad, 1)
    trow = tgt.reshape(n_kv, tkv)            # resident; row j = targets of kv tile j

    kernel = functools.partial(_proxy_loss_kernel, scale=float(scale),
                               thres=float(thres), has_pad=bool(pad))

    # Deeper kv buffering helps low-BW parts (v5e) when per-step compute is
    # short (small D) and K is actually streamed (not resident).
    kv_bufs = 3 if (n_kv > 1 and D <= 256) else 2
    if kv_bufs == 3:
        kv_spec = pl.BlockSpec((tkv, D), lambda i, j: (j, 0),
                               pipeline_mode=pl.Buffered(3))
    else:
        kv_spec = pl.BlockSpec((tkv, D), lambda i, j: (j, 0))

    vmem_limit = _vmem_limit(b_pad, D, C, tq, tkv, n_kv, mm_bytes,
                             pred_p.dtype.itemsize, kv_bufs)

    per_row = pl.pallas_call(
        kernel,
        out_shape=jax.ShapeDtypeStruct((b_pad, 1), jnp.float32),
        grid_spec=pltpu.PrefetchScalarGridSpec(
            num_scalar_prefetch=0,
            grid=(n_q, n_kv),
            in_specs=[
                pl.BlockSpec((tq, D), lambda i, j: (i, 0)),      # q rows (normalized)
                kv_spec,                                         # kv rows (normalized)
                pl.BlockSpec((tq, C), lambda i, j: (i, 0)),      # pred
                pl.BlockSpec((tq, 1), lambda i, j: (i, 0)),      # target column
                pl.BlockSpec((n_kv, tkv), lambda i, j: (0, 0)),  # target rows (resident)
            ],
            out_specs=pl.BlockSpec((tq, 1), lambda i, j: (i, 0)),
            scratch_shapes=[
                pltpu.VMEM((tq, D), matmul_dtype),   # scale-folded normalized q tile
                pltpu.VMEM((tq, 1), jnp.float32),    # running max m_i
                pltpu.VMEM((tq, 1), jnp.float32),    # running sum-exp l_i
                pltpu.VMEM((tq, 1), jnp.float32),    # target logit
            ]),
        compiler_params=pltpu.CompilerParams(
            dimension_semantics=("parallel", "arbitrary"),
            vmem_limit_bytes=vmem_limit),
    )(feat_n, feat_n, pred_p, tcol, trow)

    # nll_loss mean reduction over the B real rows (padded rows excluded).
    return jnp.mean(per_row[:B, 0])


def _proxy_loss_ref(feature, pred, target, *, scale=1.0, thres=0.1,
                    matmul_dtype=None):
    """Pure-JAX reference mirroring the PyTorch module.  If matmul_dtype is
    given, the normalized features are rounded to that dtype before the
    similarity matmul (matched-precision reference for the bf16 MXU path)."""
    feat = feature / jnp.maximum(
        jnp.linalg.norm(feature, axis=1, keepdims=True), 1e-12)
    if matmul_dtype is not None:
        feat = feat.astype(matmul_dtype)
    sim = jax.lax.dot_general(feat, feat, (((1,), (1,)), ((), ())),
                              preferred_element_type=jnp.float32)
    label = target[:, None] == target[None, :]
    sim = sim * (~label)
    sim = jnp.where(sim < thres, -jnp.inf, sim)
    logits = scale * jnp.concatenate([pred, sim], axis=1)
    logp = jax.nn.log_softmax(logits, axis=1)
    return -jnp.mean(jnp.take_along_axis(logp, target[:, None], axis=1))


if __name__ == "__main__":
    B, D, C = 16, 32, 8
    key = jax.random.PRNGKey(0)
    kf, kp, kt = jax.random.split(key, 3)
    feature = jax.random.normal(kf, (B, D), dtype=jnp.float32)
    pred = jax.random.normal(kp, (B, C), dtype=jnp.float32)
    target = jax.random.randint(kt, (B,), 0, C, dtype=jnp.int32)

    # Exact-precision path (f32 matmul operands) vs. the exact f32 reference.
    loss_f32 = proxy_loss(feature, pred, target, scale=1.0, thres=0.1,
                          matmul_dtype=jnp.float32)
    jax.block_until_ready(loss_f32)
    ref_f32 = _proxy_loss_ref(feature, pred, target, scale=1.0, thres=0.1)
    np.testing.assert_allclose(np.asarray(loss_f32), np.asarray(ref_f32),
                               rtol=1e-4, atol=1e-5)

    # Default fast path (bf16 MXU operands, f32 accumulation) vs. the
    # matched-precision reference (same rounding of the normalized features,
    # so the `thres` cutoff is applied to identical similarity values).
    loss_bf16 = proxy_loss(feature, pred, target, scale=1.0, thres=0.1)
    jax.block_until_ready(loss_bf16)
    ref_bf16 = _proxy_loss_ref(feature, pred, target, scale=1.0, thres=0.1,
                               matmul_dtype=jnp.bfloat16)
    np.testing.assert_allclose(np.asarray(loss_bf16), np.asarray(ref_bf16),
                               rtol=1e-3, atol=1e-3)

    print("KERNEL_OK")
</pallas_src>

<mosaic_0001>
module attributes {stable_mosaic.version = 11 : i64} {
  func.func @_proxy_loss_kernel(%arg0: i32, %arg1: i32, %arg2: memref<64x32xf32, #tpu.memory_space<vmem>>, %arg3: memref<128x32xf32, #tpu.memory_space<vmem>>, %arg4: memref<64x8xf32, #tpu.memory_space<vmem>>, %arg5: memref<64x1xi32, #tpu.memory_space<vmem>>, %arg6: memref<1x128xi32, #tpu.memory_space<vmem>>, %arg7: memref<64x1xf32, #tpu.memory_space<vmem>>, %arg8: memref<64x32xf32, #tpu.memory_space<vmem>>, %arg9: memref<64x1xf32, #tpu.memory_space<vmem>>, %arg10: memref<64x1xf32, #tpu.memory_space<vmem>>, %arg11: memref<64x1xf32, #tpu.memory_space<vmem>>) attributes {dimension_semantics = [#tpu.dimension_semantics<parallel>, #tpu.dimension_semantics<arbitrary>], iteration_bounds = array<i64: 2, 1>, scalar_prefetch = 0 : i64, scratch_operands = 4 : i64, tpu.core_type = #tpu.core_type<tc>, window_params = [{transform_indices = @transform_0, window_bounds = array<i64: 64, 32>}, {transform_indices = @transform_1, window_bounds = array<i64: 128, 32>}, {transform_indices = @transform_2, window_bounds = array<i64: 64, 8>}, {transform_indices = @transform_3, window_bounds = array<i64: 64, 1>}, {pipeline_mode = #tpu.pipeline_mode<synchronous>, transform_indices = @transform_4, window_bounds = array<i64: 1, 128>}, {transform_indices = @transform_5, window_bounds = array<i64: 64, 1>}]} {
    %c0_i32 = arith.constant 0 : i32
    %0 = arith.cmpi eq, %arg1, %c0_i32 : i32
    %1 = arith.extui %0 : i1 to i32
    %c0_i32_0 = arith.constant 0 : i32
    %2 = arith.cmpi ne, %1, %c0_i32_0 : i32
    scf.if %2 {
      %c0_22 = arith.constant 0 : index
      %c0_23 = arith.constant 0 : index
      %40 = vector.load %arg2[%c0_22, %c0_23] : memref<64x32xf32, #tpu.memory_space<vmem>>, vector<64x32xf32>
      %c0_24 = arith.constant 0 : index
      %c0_25 = arith.constant 0 : index
      %41 = vector.load %arg8[%c0_24, %c0_25] : memref<64x32xf32, #tpu.memory_space<vmem>>, vector<64x32xf32>
      tpu.vector_store %arg8[%c0_24, %c0_25], %40 {strides = array<i32>} : memref<64x32xf32, #tpu.memory_space<vmem>>, vector<64x32xf32>,
      %c0_26 = arith.constant 0 : index
      %c0_27 = arith.constant 0 : index
      %42 = vector.load %arg4[%c0_26, %c0_27] : memref<64x8xf32, #tpu.memory_space<vmem>>, vector<64x8xf32>
      %cst_28 = arith.constant 1.000000e+00 : f32
      %43 = vector.broadcast %cst_28 : f32 to vector<64x8xf32>
      %44 = arith.mulf %43, %42 : vector<64x8xf32>
      %cst_29 = arith.constant dense<0xFF800000> : vector<64xf32>
      %45 = vector.multi_reduction <maximumf>, %44, %cst_29 [1] : vector<64x8xf32> to vector<64xf32>
      %46 = vector.shape_cast %45 : vector<64xf32> to vector<64x1xf32>
      %47 = vector.broadcast %46 : vector<64x1xf32> to vector<64x8xf32>
      %48 = arith.subf %44, %47 : vector<64x8xf32>
      %49 = math.exp %48 : vector<64x8xf32>
      %cst_30 = arith.constant dense<0.000000e+00> : vector<64xf32>
      %50 = vector.multi_reduction <add>, %49, %cst_30 [1] : vector<64x8xf32> to vector<64xf32>
      %51 = vector.shape_cast %50 : vector<64xf32> to vector<64x1xf32>
      %52 = tpu.iota {dimensions = array<i32: 1>} : vector<64x8xi32>
      %c0_31 = arith.constant 0 : index
      %c0_32 = arith.constant 0 : index
      %53 = vector.load %arg5[%c0_31, %c0_32] : memref<64x1xi32, #tpu.memory_space<vmem>>, vector<64x1xi32>
      %54 = vector.broadcast %53 : vector<64x1xi32> to vector<64x8xi32>
      %55 = arith.cmpi eq, %52, %54 : vector<64x8xi32>
      %cst_33 = arith.constant 0.000000e+00 : f32
      %56 = vector.broadcast %cst_33 : f32 to vector<64x8xf32>
      %57 = arith.select %55, %44, %56 : vector<64x8xi1>, vector<64x8xf32>
      %cst_34 = arith.constant dense<0.000000e+00> : vector<64xf32>
      %58 = vector.multi_reduction <add>, %57, %cst_34 [1] : vector<64x8xf32> to vector<64xf32>
      %59 = vector.shape_cast %58 : vector<64xf32> to vector<64x1xf32>
      %c0_35 = arith.constant 0 : index
      %c0_36 = arith.constant 0 : index
      %60 = vector.load %arg11[%c0_35, %c0_36] : memref<64x1xf32, #tpu.memory_space<vmem>>, vector<64x1xf32>
      tpu.vector_store %arg11[%c0_35, %c0_36], %59 {strides = array<i32>} : memref<64x1xf32, #tpu.memory_space<vmem>>, vector<64x1xf32>,
      %c0_37 = arith.constant 0 : index
      %c0_38 = arith.constant 0 : index
      %61 = vector.load %arg9[%c0_37, %c0_38] : memref<64x1xf32, #tpu.memory_space<vmem>>, vector<64x1xf32>
      tpu.vector_store %arg9[%c0_37, %c0_38], %46 {strides = array<i32>} : memref<64x1xf32, #tpu.memory_space<vmem>>, vector<64x1xf32>,
      %c0_39 = arith.constant 0 : index
      %c0_40 = arith.constant 0 : index
      %62 = vector.load %arg10[%c0_39, %c0_40] : memref<64x1xf32, #tpu.memory_space<vmem>>, vector<64x1xf32>
      tpu.vector_store %arg10[%c0_39, %c0_40], %51 {strides = array<i32>} : memref<64x1xf32, #tpu.memory_space<vmem>>, vector<64x1xf32>,
    } else {
    }
    %c0 = arith.constant 0 : index
    %c0_1 = arith.constant 0 : index
    %3 = vector.load %arg8[%c0, %c0_1] : memref<64x32xf32, #tpu.memory_space<vmem>>, vector<64x32xf32>
    %c0_2 = arith.constant 0 : index
    %c0_3 = arith.constant 0 : index
    %4 = vector.load %arg3[%c0_2, %c0_3] : memref<128x32xf32, #tpu.memory_space<vmem>>, vector<128x32xf32>
    %cst = arith.constant dense<0.000000e+00> : vector<64x128xf32>
    %5 = tpu.matmul %3, %4, %cst {dimension_numbers = #tpu.dot_dimension_numbers<[1], [1], [0], [0], [0, 0, 1, 0], [], []>} : vector<64x32xf32>, vector<128x32xf32>, vector<64x128xf32> -> vector<64x128xf32>
    %6 = arith.index_cast %arg1 : i32 to index
    %c0_4 = arith.constant 0 : index
    %7 = vector.load %arg6[%6, %c0_4] : memref<1x128xi32, #tpu.memory_space<vmem>>, vector<1x128xi32>
    %c0_5 = arith.constant 0 : index
    %c0_6 = arith.constant 0 : index
    %8 = vector.load %arg5[%c0_5, %c0_6] : memref<64x1xi32, #tpu.memory_space<vmem>>, vector<64x1xi32>
    %9 = vector.broadcast %8 : vector<64x1xi32> to vector<64x128xi32>
    %10 = vector.broadcast %7 : vector<1x128xi32> to vector<64x128xi32>
    %11 = arith.cmpi eq, %9, %10 : vector<64x128xi32>
    %c0_i32_7 = arith.constant 0 : i32
    %12 = vector.broadcast %c0_i32_7 : i32 to vector<1x128xi32>
    %13 = arith.cmpi slt, %7, %12 : vector<1x128xi32>
    %14 = vector.broadcast %13 : vector<1x128xi1> to vector<64x128xi1>
    %15 = arith.ori %11, %14 : vector<64x128xi1>
    %cst_8 = arith.constant 1.000000e-01 : f32
    %16 = vector.broadcast %cst_8 : f32 to vector<64x128xf32>
    %17 = arith.cmpf olt, %5, %16 : vector<64x128xf32>
    %18 = arith.ori %15, %17 : vector<64x128xi1>
    %cst_9 = arith.constant 0xFF800000 : f32
    %19 = vector.broadcast %cst_9 : f32 to vector<64x128xf32>
    %20 = arith.select %18, %19, %5 : vector<64x128xi1>, vector<64x128xf32>
    %c0_10 = arith.constant 0 : index
    %c0_11 = arith.constant 0 : index
    %21 = vector.load %arg9[%c0_10, %c0_11] : memref<64x1xf32, #tpu.memory_space<vmem>>, vector<64x1xf32>
    %cst_12 = arith.constant dense<0xFF800000> : vector<64xf32>
    %22 = vector.multi_reduction <maximumf>, %20, %cst_12 [1] : vector<64x128xf32> to vector<64xf32>
    %23 = vector.shape_cast %22 : vector<64xf32> to vector<64x1xf32>
    %24 = arith.maximumf %21, %23 : vector<64x1xf32>
    %25 = arith.subf %21, %24 : vector<64x1xf32>
    %26 = math.exp %25 : vector<64x1xf32>
    %c0_13 = arith.constant 0 : index
    %c0_14 = arith.constant 0 : index
    %27 = vector.load %arg10[%c0_13, %c0_14] : memref<64x1xf32, #tpu.memory_space<vmem>>, vector<64x1xf32>
    %28 = arith.mulf %26, %27 : vector<64x1xf32>
    %29 = vector.broadcast %24 : vector<64x1xf32> to vector<64x128xf32>
    %30 = arith.subf %20, %29 : vector<64x128xf32>
    %31 = math.exp %30 : vector<64x128xf32>
    %cst_15 = arith.constant dense<0.000000e+00> : vector<64xf32>
    %32 = vector.multi_reduction <add>, %31, %cst_15 [1] : vector<64x128xf32> to vector<64xf32>
    %33 = vector.shape_cast %32 : vector<64xf32> to vector<64x1xf32>
    %34 = arith.addf %28, %33 : vector<64x1xf32>
    %c0_16 = arith.constant 0 : index
    %c0_17 = arith.constant 0 : index
    %35 = vector.load %arg10[%c0_16, %c0_17] : memref<64x1xf32, #tpu.memory_space<vmem>>, vector<64x1xf32>
    tpu.vector_store %arg10[%c0_16, %c0_17], %34 {strides = array<i32>} : memref<64x1xf32, #tpu.memory_space<vmem>>, vector<64x1xf32>,
    %c0_18 = arith.constant 0 : index
    %c0_19 = arith.constant 0 : index
    %36 = vector.load %arg9[%c0_18, %c0_19] : memref<64x1xf32, #tpu.memory_space<vmem>>, vector<64x1xf32>
    tpu.vector_store %arg9[%c0_18, %c0_19], %24 {strides = array<i32>} : memref<64x1xf32, #tpu.memory_space<vmem>>, vector<64x1xf32>,
    %c0_i32_20 = arith.constant 0 : i32
    %37 = arith.cmpi eq, %arg1, %c0_i32_20 : i32
    %38 = arith.extui %37 : i1 to i32
    %c0_i32_21 = arith.constant 0 : i32
    %39 = arith.cmpi ne, %38, %c0_i32_21 : i32
    scf.if %39 {
      %c0_22 = arith.constant 0 : index
      %c0_23 = arith.constant 0 : index
      %40 = vector.load %arg9[%c0_22, %c0_23] : memref<64x1xf32, #tpu.memory_space<vmem>>, vector<64x1xf32>
      %c0_24 = arith.constant 0 : index
      %c0_25 = arith.constant 0 : index
      %41 = vector.load %arg10[%c0_24, %c0_25] : memref<64x1xf32, #tpu.memory_space<vmem>>, vector<64x1xf32>
      %42 = math.log %41 : vector<64x1xf32>
      %43 = arith.addf %40, %42 : vector<64x1xf32>
      %c0_26 = arith.constant 0 : index
      %c0_27 = arith.constant 0 : index
      %44 = vector.load %arg11[%c0_26, %c0_27] : memref<64x1xf32, #tpu.memory_space<vmem>>, vector<64x1xf32>
      %45 = arith.subf %43, %44 : vector<64x1xf32>
      %c0_28 = arith.constant 0 : index
      %c0_29 = arith.constant 0 : index
      %46 = vector.load %arg7[%c0_28, %c0_29] : memref<64x1xf32, #tpu.memory_space<vmem>>, vector<64x1xf32>
      tpu.vector_store %arg7[%c0_28, %c0_29], %45 {strides = array<i32>} : memref<64x1xf32, #tpu.memory_space<vmem>>, vector<64x1xf32>,
    } else {
    }
    return
  }
  func.func @transform_0(%arg0: i32, %arg1: i32) -> (i32, i32) {
    %c0_i32 = arith.constant 0 : i32
    %c0_i32_0 = arith.constant 0 : i32
    return %arg0, %c0_i32 : i32, i32
  }
  func.func @transform_1(%arg0: i32, %arg1: i32) -> (i32, i32) {
    %c0_i32 = arith.constant 0 : i32
    %c0_i32_0 = arith.constant 0 : i32
    return %arg1, %c0_i32 : i32, i32
  }
  func.func @transform_2(%arg0: i32, %arg1: i32) -> (i32, i32) {
    %c0_i32 = arith.constant 0 : i32
    %c0_i32_0 = arith.constant 0 : i32
    return %arg0, %c0_i32 : i32, i32
  }
  func.func @transform_3(%arg0: i32, %arg1: i32) -> (i32, i32) {
    %c0_i32 = arith.constant 0 : i32
    %c0_i32_0 = arith.constant 0 : i32
    return %arg0, %c0_i32 : i32, i32
  }
  func.func @transform_4(%arg0: i32, %arg1: i32) -> (i32, i32) {
    %c0_i32 = arith.constant 0 : i32
    %c0_i32_0 = arith.constant 0 : i32
    %c0_i32_1 = arith.constant 0 : i32
    return %c0_i32, %c0_i32_0 : i32, i32
  }
  func.func @transform_5(%arg0: i32, %arg1: i32) -> (i32, i32) {
    %c0_i32 = arith.constant 0 : i32
    %c0_i32_0 = arith.constant 0 : i32
    return %arg0, %c0_i32 : i32, i32
  }
}

</mosaic_0001>

<bundles_post_ra>
// kernel: tpu_custom_call.1
= control target key start
LH: loop header
LB: loop body
LE: loop exit
PB: predicated region body
PF: predicated region fallthrough
CT: control target
= control target key end

     0   :  { %s1429_s18 = smov 0   ;;  %s1431_s19 = smov 0   ;;  %s1975_s0 = inlined_call_operand.vmem [shape: f32[128,32], index: 0, kind: input, shape index: {}]   ;;  %s1976_s1 = inlined_call_operand.vmem [shape: f32[128,32], index: 1, kind: input, shape index: {}]   ;;  %s1977_s2 = inlined_call_operand.vmem [shape: f32[128,8], index: 2, kind: input, shape index: {}]   ;;  %s1978_s3 = inlined_call_operand.vmem [shape: s32[128,1], index: 3, kind: input, shape index: {}]   ;;  %s1979_s4 = inlined_call_operand.vmem [shape: s32[1,128], index: 4, kind: input, shape index: {}]   ;;  %s1980_s5 = inlined_call_operand.vmem [shape: f32[128,1], index: 5, kind: output, shape index: {}]  }
   0x1   :  { %s1433_s20 = smov 0  }
   0x2 LB: > { %s27_s21 = sadd.s32 1, %s1392_s19  ;;  %p1148_p0 = scmp.ge.s32.totalorder %s1396_s20, 1  ;;  %s1396_s20 = sphi %s1433_s20, %s15_s20   ;;  %s1392_s19 = sphi %s1431_s19, %s2000_s19   ;;  %s1388_s18 = sphi %s1429_s18, %s1999_s18  }
   0x3   : > { %p29_p1 = scmp.ge.s32.totalorder %s27_s21, 2  ;;  %p233_p2 = scmp.lt.s32.totalorder %s1396_s20, 3 }
   0x5   : > { %s2002_s21 = smov (%p29_p1, %s27_s21), 0  ;;  %p234_p3 = pnand %p1148_p0, %p233_p2 }
   0x6   : > { %s1149_s26 = sshll.u32 (!%p234_p3), %s1388_s18, 3 }
   0x7   : > { %237 = sbr.rel (%p234_p3) target bundleno = 744 (0x2e8), region = 40  ;;  %p277_p4 = scmp.lt.s32.totalorder (!%p234_p3), %s1149_s26, 15 }
   0xc   : > { %vm318_vm0 = vcmask 261120   ;;  %v530_v0 = vld [vmem:[%s1976_s1 + $0x78] sm:$0xff]  ;;  %v529_v1 = vld [vmem:[%s1976_s1 + $0x70] sm:$0xff]  ;;  %s2004_s26 = smov (!%p277_p4, %s1149_s26), 15  ;;  %v528_v2 = vld [vmem:[%s1976_s1 + $0x68] sm:$0xff]  ;;  %v1398_v3 = vmov 0   ;;  %v408_v57 = vlaneseq }
   0xd   : > { %1207 = vmatprep.subr.msk.mxu0 %vm318_vm0, %v530_v0  ;;  %1251 = vmatprep.subr.msk.mxu1 %vm318_vm0, %v530_v0  ;;  %s1464_s29 = sshll.u32 %s2004_s26, 3  ;;  %v527_v4 = vld [vmem:[%s1976_s1 + $0x60] sm:$0xff]  ;;  %v526_v15 = vld [vmem:[%s1976_s1 + $0x58] sm:$0xff]  ;;  %v525_v20 = vld [vmem:[%s1976_s1 + $0x50] sm:$0xff]  ;;  %vm335_vm1 = vcmask 64512  }
   0xe   : > { %1208 = vmatpush3.xpose.msk.msra.mxu0 %vm318_vm0, %v530_v0  ;;  %1267 = vmatpush3.xpose.msk.msra.mxu1 %vm318_vm0, %v530_v0  ;;  %s280_s9 = scalar_lea.vmem %s1975_s0, %s1464_s29  ;;  %s1479_s12 = scalar_lea.vmem %s1978_s3, %s1464_s29  ;;  %v524_v23 = vld [vmem:[%s1976_s1 + $0x48] sm:$0xff]  ;;  %v523_v26 = vld [vmem:[%s1976_s1 + $0x40] sm:$0xff]  ;;  %v522_v27 = vld [vmem:[%s1976_s1 + $0x38] sm:$0xff]  ;;  %v744_v59 = vshrl.u32 %v408_v57, 7 }
   0xf   : > { %1209 = vmatprep.subr.msk.mxu0 %vm318_vm0, %v529_v1  ;;  %1252 = vmatprep.subr.msk.mxu1 %vm318_vm0, %v529_v1  ;;  %v310_v5 = vld [vmem:[%s280_s9] sm:$0xff]  ;;  %v311_v7 = vld [vmem:[%s280_s9 + $0x8] sm:$0xff]  ;;  %v312_v9 = vld [vmem:[%s280_s9 + $0x10] sm:$0xff]  ;;  %s1946_s26 = scalar_lea.vmem %s1980_s5, %s1464_s29 }
  0x10   : > { %1309 = vset.pattern.permute.xlu1 %v1398_v3  ;;  %1308 = vset.pattern.permute.xlu0 %v1398_v3  ;;  %v314_v6 = vld [vmem:[%s280_s9 + $0x20] sm:$0xff]  ;;  %319 = vst.msk [vmem:[#allocation2] sm:$0xff] %vm318_vm0, %v310_v5  ;;  %320 = vst.msk [vmem:[#allocation2 + $0x8] sm:$0xff] %vm318_vm0, %v311_v7  ;;  %v315_v8 = vld [vmem:[%s280_s9 + $0x28] sm:$0xff]  ;;  %v745_v60 = vsub.s32 0, %v744_v59 }
  0x11   : > { %323 = vst.msk [vmem:[#allocation2 + $0x20] sm:$0xff] %vm318_vm0, %v314_v6  ;;  %v316_v10 = vld [vmem:[%s280_s9 + $0x30] sm:$0xff]  ;;  %324 = vst.msk [vmem:[#allocation2 + $0x28] sm:$0xff] %vm318_vm0, %v315_v8  ;;  %v313_v11 = vld [vmem:[%s280_s9 + $0x18] sm:$0xff] }
  0x12   : > { %1210 = vmatpush3.xpose.msk.msra.mxu0 %vm318_vm0, %v529_v1  ;;  %1268 = vmatpush3.xpose.msk.msra.mxu1 %vm318_vm0, %v529_v1  ;;  %321 = vst.msk [vmem:[#allocation2 + $0x10] sm:$0xff] %vm318_vm0, %v312_v9  ;;  %325 = vst.msk [vmem:[#allocation2 + $0x30] sm:$0xff] %vm318_vm0, %v316_v10  ;;  %v317_v12 = vld [vmem:[%s280_s9 + $0x38] sm:$0xff]  ;;  %v1490_v13 = vld [vmem:[%s1479_s12 + $0x10] sm:$0xff] }
  0x13   : > { %1211 = vmatprep.subr.msk.mxu0 %vm318_vm0, %v528_v2  ;;  %1253 = vmatprep.subr.msk.mxu1 %vm318_vm0, %v528_v2  ;;  %322 = vst.msk [vmem:[#allocation2 + $0x18] sm:$0xff] %vm318_vm0, %v313_v11  ;;  %326 = vst.msk [vmem:[#allocation2 + $0x38] sm:$0xff] %vm318_vm0, %v317_v12  ;;  %v1497_v14 = vld [vmem:[%s1479_s12] sm:$0xff]  ;;  %v1509_v16 = vld [vmem:[%s1479_s12 + $0x18] sm:$0xff] }
  0x14   : > { %726 = vperm.xlu1 %1309, %v1490_v13   ;;  %720 = vperm.xlu0 %1308, %v1497_v14   ;;  %v1512_v17 = vld [vmem:[%s1479_s12 + $0x8] sm:$0xff]  ;;  %v1529_v22 = vld [vmem:[%s1479_s12 + $0x20] sm:$0xff]  ;;  %v1541_v24 = vld [vmem:[%s1479_s12 + $0x38] sm:$0xff] }
  0x15   : > { %v1526_v21 = vld [vmem:[%s1479_s12 + $0x28] sm:$0xff]  ;;  %v1544_v25 = vld [vmem:[%s1479_s12 + $0x30] sm:$0xff]  ;;  %v519_v30 = vld [vmem:[%s1976_s1 + $0x20] sm:$0xff]  ;;  %s1596_s12 = scalar_lea.vmem %s1977_s2, %s1464_s29 }
  0x16   : > { %1212 = vmatpush3.xpose.msk.msra.mxu0 %vm318_vm0, %v528_v2  ;;  %1269 = vmatpush3.xpose.msk.msra.mxu1 %vm318_vm0, %v528_v2  ;;  %v521_v28 = vld [vmem:[%s1976_s1 + $0x30] sm:$0xff]  ;;  %v520_v29 = vld [vmem:[%s1976_s1 + $0x28] sm:$0xff]  ;;  %v518_v31 = vld [vmem:[%s1976_s1 + $0x18] sm:$0xff] }
  0x17   : > { %1213 = vmatprep.subr.msk.mxu0 %vm318_vm0, %v527_v4  ;;  %1254 = vmatprep.subr.msk.mxu1 %vm318_vm0, %v527_v4  ;;  %v507_v18 = vld [vmem:[#allocation2] sm:$0xff]  ;;  %v517_v32 = vld [vmem:[%s1976_s1 + $0x10] sm:$0xff]  ;;  %v516_v34 = vld [vmem:[%s1976_s1 + $0x8] sm:$0xff] }
  0x18   : > { %v511_v19 = vld [vmem:[#allocation2 + $0x20] sm:$0xff]  ;;  %1239 = vmatprep.mubr.msk.f32.mxu0 %vm318_vm0, %v507_v18  ;;  %729 = vperm.xlu1 %1309, %v1509_v16   ;;  %v1616_v36 = vld [vmem:[%s1596_s12 + $0x10] sm:$0xff]  ;;  %v1621_v37 = vld [vmem:[%s1596_s12 + $0x8] sm:$0xff] }
  0x19   : > { %1245 = vmatprep.mubr.msk.f32.mxu1 %vm318_vm0, %v511_v19  ;;  %723 = vperm.xlu0 %1308, %v1512_v17   ;;  %v1604_v33 = vld [vmem:[%s1596_s12] sm:$0xff]  ;;  %v342_v39 = vsel %vm335_vm1, %v1616_v36, -inf  ;;  %v339_v40 = vsel %vm335_vm1, %v1621_v37, -inf  ;;  %v1633_v41 = vld [vmem:[%s1596_s12 + $0x18] sm:$0xff]  ;;  %v508_v44 = vld [vmem:[#allocation2 + $0x8] sm:$0xff] }
  0x1a   : > { %1214 = vmatpush3.xpose.msk.msra.mxu0 %vm318_vm0, %v527_v4  ;;  %1270 = vmatpush3.xpose.msk.msra.mxu1 %vm318_vm0, %v527_v4  ;;  %v336_v35 = vsel %vm335_vm1, %v1604_v33, -inf  ;;  %v515_v38 = vld [vmem:[%s1976_s1] sm:$0xff]  ;;  %v345_v42 = vsel %vm335_vm1, %v1633_v41, -inf  ;;  %v512_v45 = vld [vmem:[#allocation2 + $0x28] sm:$0xff]  ;;  %v509_v47 = vld [vmem:[#allocation2 + $0x10] sm:$0xff] }
  0x1b   : > { %1215 = vmatprep.subr.msk.mxu0 %vm318_vm0, %v526_v15  ;;  %1255 = vmatprep.subr.msk.mxu1 %vm318_vm0, %v526_v15  ;;  %v1640_v43 = vld [vmem:[%s1596_s12 + $0x20] sm:$0xff]  ;;  %v1645_v46 = vld [vmem:[%s1596_s12 + $0x28] sm:$0xff]  ;;  %v513_v48 = vld [vmem:[#allocation2 + $0x30] sm:$0xff] }
  0x1c   : > { %735 = vperm.xlu1 %1309, %v1526_v21   ;;  %v348_v49 = vsel %vm335_vm1, %v1640_v43, -inf  ;;  %v351_v50 = vsel %vm335_vm1, %v1645_v46, -inf  ;;  %v1654_v51 = vld [vmem:[%s1596_s12 + $0x30] sm:$0xff]  ;;  %v510_v52 = vld [vmem:[#allocation2 + $0x18] sm:$0xff]  ;;  %v710_v58 = vld [vmem:[%s1979_s4] sm:$0x1] }
  0x1d   : > { %732 = vperm.xlu0 %1308, %v1529_v22   ;;  %v514_v53 = vld [vmem:[#allocation2 + $0x38] sm:$0xff]  ;;  %v354_v55 = vsel %vm335_vm1, %v1654_v51, -inf  ;;  %vm755_vm2 = vcmp.lt.s32.totalorder %v710_v58, 0  ;;  %v746_v63 = vrot.slane %v710_v58, %v745_v60 }
  0x1e   : > { %1216 = vmatpush3.xpose.msk.msra.mxu0 %vm318_vm0, %v526_v15  ;;  %1271 = vmatpush3.xpose.msk.msra.mxu1 %vm318_vm0, %v526_v15  ;;  %v1659_v54 = vld [vmem:[%s1596_s12 + $0x38] sm:$0xff]  ;;  %v756_v61 = vsel %vm755_vm2, 1, %v1398_v3 }
  0x1f   : > { %1217 = vmatprep.subr.msk.mxu0 %vm318_vm0, %v525_v20  ;;  %1256 = vmatprep.subr.msk.mxu1 %vm318_vm0, %v525_v20  ;;  %v357_v56 = vsel %vm335_vm1, %v1659_v54, -inf  ;;  %v760_v62 = vrot.slane %v756_v61, %v745_v60 }
  0x20   : > { %741 = vperm.xlu1 %1309, %v1541_v24  }
  0x21   : > { %738 = vperm.xlu0 %1308, %v1544_v25   ;;  %vm761_vm3 = vcmp.eq.s32.totalorder %v760_v62, 1 }
  0x22   : > { %1218 = vmatpush3.xpose.msk.msra.mxu0 %vm318_vm0, %v525_v20  ;;  %1272 = vmatpush3.xpose.msk.msra.mxu1 %vm318_vm0, %v525_v20 }
  0x23   : > { %1219 = vmatprep.subr.msk.mxu0 %vm318_vm0, %v524_v23  ;;  %1257 = vmatprep.subr.msk.mxu1 %vm318_vm0, %v524_v23 }
  0x26   : > { %1220 = vmatpush3.xpose.msk.msra.mxu0 %vm318_vm0, %v524_v23  ;;  %1273 = vmatpush3.xpose.msk.msra.mxu1 %vm318_vm0, %v524_v23 }
  0x27   : > { %1221 = vmatprep.subr.msk.mxu0 %vm318_vm0, %v523_v26  ;;  %1258 = vmatprep.subr.msk.mxu1 %vm318_vm0, %v523_v26 }
  0x2a   : > { %1222 = vmatpush3.xpose.msk.msra.mxu0 %vm318_vm0, %v523_v26  ;;  %1274 = vmatpush3.xpose.msk.msra.mxu1 %vm318_vm0, %v523_v26 }
  0x2b   : > { %1223 = vmatprep.subr.msk.mxu0 %vm318_vm0, %v522_v27  ;;  %1259 = vmatprep.subr.msk.mxu1 %vm318_vm0, %v522_v27 }
  0x2e   : > { %1224 = vmatpush3.xpose.msk.msra.mxu0 %vm318_vm0, %v522_v27  ;;  %1275 = vmatpush3.xpose.msk.msra.mxu1 %vm318_vm0, %v522_v27 }
  0x2f   : > { %1225 = vmatprep.subr.msk.mxu0 %vm318_vm0, %v521_v28  ;;  %1260 = vmatprep.subr.msk.mxu1 %vm318_vm0, %v521_v28 }
  0x32   : > { %1226 = vmatpush3.xpose.msk.msra.mxu0 %vm318_vm0, %v521_v28  ;;  %1276 = vmatpush3.xpose.msk.msra.mxu1 %vm318_vm0, %v521_v28 }
  0x33   : > { %1227 = vmatprep.subr.msk.mxu0 %vm318_vm0, %v520_v29  ;;  %1261 = vmatprep.subr.msk.mxu1 %vm318_vm0, %v520_v29 }
  0x36   : > { %1228 = vmatpush3.xpose.msk.msra.mxu0 %vm318_vm0, %v520_v29  ;;  %1277 = vmatpush3.xpose.msk.msra.mxu1 %vm318_vm0, %v520_v29 }
  0x37   : > { %1229 = vmatprep.subr.msk.mxu0 %vm318_vm0, %v519_v30  ;;  %1262 = vmatprep.subr.msk.mxu1 %vm318_vm0, %v519_v30 }
  0x3a   : > { %1230 = vmatpush3.xpose.msk.msra.mxu0 %vm318_vm0, %v519_v30  ;;  %1278 = vmatpush3.xpose.msk.msra.mxu1 %vm318_vm0, %v519_v30 }
  0x3b   : > { %1231 = vmatprep.subr.msk.mxu0 %vm318_vm0, %v518_v31  ;;  %1263 = vmatprep.subr.msk.mxu1 %vm318_vm0, %v518_v31 }
  0x3e   : > { %1232 = vmatpush3.xpose.msk.msra.mxu0 %vm318_vm0, %v518_v31  ;;  %1279 = vmatpush3.xpose.msk.msra.mxu1 %vm318_vm0, %v518_v31 }
  0x3f   : > { %1233 = vmatprep.subr.msk.mxu0 %vm318_vm0, %v517_v32  ;;  %1264 = vmatprep.subr.msk.mxu1 %vm318_vm0, %v517_v32 }
  0x40   : > { %337 = vmax.xlane.f32.xlu0 %v336_v35 }
  0x42   : > { %1234 = vmatpush3.xpose.msk.msra.mxu0 %vm318_vm0, %v517_v32  ;;  %1280 = vmatpush3.xpose.msk.msra.mxu1 %vm318_vm0, %v517_v32 }
  0x43   : > { %1235 = vmatprep.subr.msk.mxu0 %vm318_vm0, %v516_v34  ;;  %1265 = vmatprep.subr.msk.mxu1 %vm318_vm0, %v516_v34 }
  0x44   : > { %343 = vmax.xlane.f32.xlu0 %v342_v39  ;;  %340 = vmax.xlane.f32.xlu1 %v339_v40 }
  0x46   : > { %1236 = vmatpush3.xpose.msk.msra.mxu0 %vm318_vm0, %v516_v34  ;;  %1281 = vmatpush3.xpose.msk.msra.mxu1 %vm318_vm0, %v516_v34 }
  0x47   : > { %1237 = vmatprep.subr.msk.mxu0 %vm318_vm0, %v515_v38  ;;  %1266 = vmatprep.subr.msk.mxu1 %vm318_vm0, %v515_v38 }
  0x48   : > { %346 = vmax.xlane.f32.xlu0 %v345_v42  ;;  %349 = vmax.xlane.f32.xlu1 %v348_v49 }
  0x4a   : > { %1238 = vmatpush3.xpose.msk.msra.mxu0 %vm318_vm0, %v515_v38  ;;  %1282 = vmatpush3.xpose.msk.msra.mxu1 %vm318_vm0, %v515_v38 }
  0x4c   : > { %352 = vmax.xlane.f32.xlu0 %v351_v50  ;;  %355 = vmax.xlane.f32.xlu1 %v354_v55 }
  0x4d   : > { %1240 = vmatmul.mubr.msk.f32.vlgmr.msra.gmra.mxu0 %vm318_vm0, %v508_v44  ;;  %1246 = vmatmul.mubr.msk.f32.vlgmr.msra.gmra.mxu1 %vm318_vm0, %v512_v45 }
  0x4e   : > { %1242 = vmatprep.mubr.msk.f32.mxu0 %vm318_vm0, %v509_v47  ;;  %1248 = vmatprep.mubr.msk.f32.mxu1 %vm318_vm0, %v513_v48 }
  0x50   : > { %358 = vmax.xlane.f32.xlu0 %v357_v56 }
  0x51   : > { %1243 = vmatmul.mubr.msk.f32.gmra.mxu0 %vm318_vm0, %v510_v52  ;;  %1249 = vmatmul.mubr.msk.f32.gmra.mxu1 %vm318_vm0, %v514_v53 }
  0x8f   : > { %v721_v0 = vpop.permute.xlu0 %720  ;;  %v727_v1 = vpop.permute.xlu1 %726 }
  0x90   : > { %vm747_vm4 = vcmp.eq.s32.totalorder %v721_v0, %v746_v63  ;;  %vm749_vm5 = vcmp.eq.s32.totalorder %v727_v1, %v746_v63 }
  0x91   : > { %vm1673_vm6 = vmor %vm747_vm4, %vm761_vm3 }
  0x92   : > { %vm1678_vm7 = vmor %vm749_vm5, %vm761_vm3 }
  0x93   : > { %v730_v6 = vpop.permute.xlu1 %729 }
  0x94   : > { %v724_v5 = vpop.permute.xlu0 %723  ;;  %vm750_vm9 = vcmp.eq.s32.totalorder %v730_v6, %v746_v63 }
  0x95   : > { %vm748_vm8 = vcmp.eq.s32.totalorder %v724_v5, %v746_v63  ;;  %vm1688_vm11 = vmor %vm750_vm9, %vm761_vm3 }
  0x96   : > { %vm1683_vm10 = vmor %vm748_vm8, %vm761_vm3  ;;  %vm482_vm8 = vcmask 7168  }
  0x97   : > { %v736_v9 = vpop.permute.xlu1 %735 }
  0x98   : > { %v733_v8 = vpop.permute.xlu0 %732  ;;  %vm752_vm13 = vcmp.eq.s32.totalorder %v736_v9, %v746_v63 }
  0x99   : > { %vm751_vm12 = vcmp.eq.s32.totalorder %v733_v8, %v746_v63  ;;  %vm1698_vm15 = vmor %vm752_vm13, %vm761_vm3 }
  0x9a   : > { %vm1693_vm14 = vmor %vm751_vm12, %vm761_vm3 }
  0x9b   : > { %v742_v15 = vpop.permute.xlu1 %741 }
  0x9c   : > { %v739_v12 = vpop.permute.xlu0 %738  ;;  %vm754_vm2 = vcmp.eq.s32.totalorder %v742_v15, %v746_v63 }
  0x9d   : > { %vm753_vm0 = vcmp.eq.s32.totalorder %v739_v12, %v746_v63  ;;  %vm1708_vm5 = vmor %vm754_vm2, %vm761_vm3 }
  0x9e   : > { %vm1703_vm4 = vmor %vm753_vm0, %vm761_vm3 }
  0xc9   : > { %v338_v20 = vpop.xlane.xlu0 %337 }
  0xca   : > { %491 = vst.msk [vmem:[#allocation3] sm:$0xff] %vm482_vm8, %v338_v20  ;;  %v360_v34 = vsub.f32 %v1604_v33, %v338_v20 }
  0xcc   : > { %v368_v39 = vmul.f32 1.442695, %v360_v34 }
  0xcd   : > { %v344_v23 = vpop.xlane.xlu0 %343  ;;  %v341_v26 = vpop.xlane.xlu1 %340 }
  0xce   : > { %493 = vst.msk [vmem:[#allocation3 + $0x10] sm:$0xff] %vm482_vm8, %v344_v23  ;;  %492 = vst.msk [vmem:[#allocation3 + $0x8] sm:$0xff] %vm482_vm8, %v341_v26  ;;  %v361_v32 = vsub.f32 %v1621_v37, %v341_v26  ;;  %v362_v40 = vsub.f32 %v1616_v36, %v344_v23 }
  0xd0   : > { %v370_v38 = vmul.f32 1.442695, %v361_v32  ;;  %v372_v48 = vmul.f32 1.442695, %v362_v40 }
  0xd1   : > { %v347_v27 = vpop.xlane.xlu0 %346  ;;  %v350_v28 = vpop.xlane.xlu1 %349  ;;  %v1788_v40 = vld [vmem:[#allocation3] sm:$0xff] }
  0xd2   : > { %494 = vst.msk [vmem:[#allocation3 + $0x18] sm:$0xff] %vm482_vm8, %v347_v27  ;;  %495 = vst.msk [vmem:[#allocation3 + $0x20] sm:$0xff] %vm482_vm8, %v350_v28  ;;  %v363_v35 = vsub.f32 %v1633_v41, %v347_v27  ;;  %1310 = vpow2.f32 %v370_v38  ;;  %v364_v55 = vsub.f32 %v1640_v43, %v350_v28 }
  0xd3   : > { %1312 = vpow2.f32 %v368_v39 }
  0xd4   : > { %v374_v45 = vmul.f32 1.442695, %v363_v35  ;;  %v376_v0 = vmul.f32 1.442695, %v364_v55 }
  0xd5   : > { %v353_v29 = vpop.xlane.xlu0 %352  ;;  %v356_v30 = vpop.xlane.xlu1 %355  ;;  %v1783_v35 = vld [vmem:[#allocation3 + $0x8] sm:$0xff] }
  0xd6   : > { %496 = vst.msk [vmem:[#allocation3 + $0x28] sm:$0xff] %vm482_vm8, %v353_v29  ;;  %497 = vst.msk [vmem:[#allocation3 + $0x30] sm:$0xff] %vm482_vm8, %v356_v30  ;;  %v365_v47 = vsub.f32 %v1645_v46, %v353_v29  ;;  %1314 = vpow2.f32 %v374_v45  ;;  %v366_v1 = vsub.f32 %v1654_v51, %v356_v30 }
  0xd7   : > { %1316 = vpow2.f32 %v372_v48 }
  0xd8   : > { %v378_v60 = vmul.f32 1.442695, %v365_v47  ;;  %v380_v8 = vmul.f32 1.442695, %v366_v1  ;;  %v1827_v1 = vld [vmem:[#allocation3 + $0x10] sm:$0xff] }
  0xd9   : > { %v359_v31 = vpop.xlane.xlu0 %358  ;;  %v1807_v53 = vld [vmem:[#allocation3 + $0x20] sm:$0xff] }
  0xda   : > { %498 = vst.msk [vmem:[#allocation3 + $0x38] sm:$0xff] %vm482_vm8, %v359_v31  ;;  %v367_v61 = vsub.f32 %v1659_v54, %v359_v31  ;;  %1318 = vpow2.f32 %v378_v60  ;;  %v1817_v60 = vld [vmem:[#allocation3 + $0x18] sm:$0xff] }
  0xdb   : > { %1320 = vpow2.f32 %v376_v0 }
  0xdc   : > { %v382_v6 = vmul.f32 1.442695, %v367_v61 }
  0xdd   : > { %v1798_v47 = vld [vmem:[#allocation3 + $0x28] sm:$0xff] }
  0xde   : > { %1322 = vpow2.f32 %v382_v6 }
  0xdf   : > { %v1311_v9 = vpop.eup %1310  ;;  %1324 = vpow2.f32 %v380_v8 }
  0xe0   : > { %v1313_v4 = vpop.eup %1312  ;;  %v387_v15 = vsel %vm335_vm1, %v1311_v9, 0.0 }
  0xe1   : > { %v384_v20 = vsel %vm335_vm1, %v1313_v4, 0.0  ;;  %v1837_v9 = vld [vmem:[#allocation3 + $0x38] sm:$0xff] }
  0xe3   : > { %v1315_v11 = vpop.eup %1314 }
  0xe4   : > { %v1317_v19 = vpop.eup %1316  ;;  %v393_v18 = vsel %vm335_vm1, %v1315_v11, 0.0 }
  0xe5   : > { %v390_v26 = vsel %vm335_vm1, %v1317_v19, 0.0  ;;  %v1846_v19 = vld [vmem:[#allocation3 + $0x30] sm:$0xff] }
  0xe7   : > { %v1319_v23 = vpop.eup %1318 }
  0xe8   : > { %v1321_v27 = vpop.eup %1320  ;;  %v399_v28 = vsel %vm335_vm1, %v1319_v23, 0.0 }
  0xe9   : > { %v396_v30 = vsel %vm335_vm1, %v1321_v27, 0.0 }
  0xeb   : > { %v1323_v29 = vpop.eup %1322 }
  0xec   : > { %v1325_v31 = vpop.eup %1324  ;;  %v405_v32 = vsel %vm335_vm1, %v1323_v29, 0.0 }
  0xed   : > { %v402_v34 = vsel %vm335_vm1, %v1325_v31, 0.0 }
 0x10d   : > { %v1241_v42 = vpop.f32.mrf.mxu0  ;;  %v1247_v44 = vpop.f32.mrf.mxu1 }
 0x10e   : > { %vm771_vm3 = vcmp.lt.f32.partialorder %v1241_v42, 0.1  ;;  %vm775_vm9 = vcmp.lt.f32.partialorder %v1247_v44, 0.1 }
 0x10f   : > { %v670_v49 = vpop.f32.mrf.mxu0  ;;  %v690_v50 = vpop.f32.mrf.mxu1  ;;  %vm779_vm12 = vmor %vm1683_vm10, %vm771_vm3 }
 0x110   : > { %vm770_vm13 = vcmp.lt.f32.partialorder %v670_v49, 0.1  ;;  %vm774_vm0 = vcmp.lt.f32.partialorder %v690_v50, 0.1  ;;  %v1727_v52 = vsel %vm779_vm12, -inf, %v1241_v42  ;;  %vm1731_vm2 = vmor %vm1698_vm15, %vm775_vm9 }
 0x111   : > { %v1250_v56 = vpop.f32.mrf.mxu1  ;;  %804 = vmax.xlane.f32.xlu0 %v1727_v52  ;;  %v1244_v58 = vpop.f32.mrf.mxu0  ;;  %vm778_vm10 = vmor %vm1673_vm6, %vm770_vm13  ;;  %v1748_v63 = vsel %vm1731_vm2, -inf, %v1247_v44 }
 0x112   : > { %vm773_vm3 = vcmp.lt.f32.partialorder %v1244_v58, 0.1  ;;  %v1739_v59 = vsel %vm778_vm10, -inf, %v670_v49  ;;  %vm782_vm15 = vmor %vm1693_vm14, %vm774_vm0  ;;  %vm777_vm12 = vcmp.lt.f32.partialorder %v1250_v56, 0.1 }
 0x113   : > { %802 = vmax.xlane.f32.xlu1 %v1739_v59  ;;  %v680_v62 = vpop.f32.mrf.mxu0  ;;  %v700_v2 = vpop.f32.mrf.mxu1  ;;  %vm781_vm6 = vmor %vm1688_vm11, %vm773_vm3  ;;  %v1754_v5 = vsel %vm782_vm15, -inf, %v690_v50 }
 0x114   : > { %vm772_vm9 = vcmp.lt.f32.partialorder %v680_v62, 0.1  ;;  %vm776_vm13 = vcmp.lt.f32.partialorder %v700_v2, 0.1  ;;  %v1759_v3 = vsel %vm781_vm6, -inf, %v1244_v58  ;;  %vm785_vm11 = vmor %vm1708_vm5, %vm777_vm12 }
 0x115   : > { %812 = vmax.xlane.f32.xlu0 %v1748_v63  ;;  %vm780_vm14 = vmor %vm1678_vm7, %vm772_vm9  ;;  %v1769_v10 = vsel %vm785_vm11, -inf, %v1250_v56 }
 0x116   : > { %v1764_v7 = vsel %vm780_vm14, -inf, %v680_v62  ;;  %vm784_vm0 = vmor %vm1703_vm4, %vm776_vm13 }
 0x117   : > { %810 = vmax.xlane.f32.xlu1 %v1754_v5  ;;  %v1772_v12 = vsel %vm784_vm0, -inf, %v700_v2 }
 0x119   : > { %808 = vmax.xlane.f32.xlu0 %v1759_v3 }
 0x11b   : > { %806 = vmax.xlane.f32.xlu1 %v1764_v7 }
 0x11d   : > { %816 = vmax.xlane.f32.xlu0 %v1769_v10 }
 0x11f   : > { %814 = vmax.xlane.f32.xlu1 %v1772_v12 }
 0x121   : > { %388 = vadd.xlane.f32.xlu0 %v387_v15 }
 0x123   : > { %385 = vadd.xlane.f32.xlu1 %v384_v20 }
 0x125   : > { %394 = vadd.xlane.f32.xlu0 %v393_v18 }
 0x127   : > { %391 = vadd.xlane.f32.xlu1 %v390_v26 }
 0x129   : > { %400 = vadd.xlane.f32.xlu0 %v399_v28 }
 0x12b   : > { %397 = vadd.xlane.f32.xlu1 %v396_v30 }
 0x12d   : > { %406 = vadd.xlane.f32.xlu0 %v405_v32 }
 0x12f   : > { %403 = vadd.xlane.f32.xlu1 %v402_v34 }
 0x19a   : > { %v805_v38 = vpop.xlane.xlu0 %804 }
 0x19b   : > { %v1786_v39 = vmax.f32 %v1783_v35, %v805_v38 }
 0x19c   : > { %v803_v42 = vpop.xlane.xlu1 %802 }
 0x19d   : > { %v827_v44 = vsub.f32 %v1783_v35, %v1786_v39  ;;  %964 = vst.msk [vmem:[#allocation3 + $0x8] sm:$0xff] %vm482_vm8, %v1786_v39  ;;  %v1795_v45 = vmax.f32 %v1788_v40, %v803_v42  ;;  %873 = vperm.xlu0 %1308, %v1786_v39  }
 0x19e   : > { %v813_v48 = vpop.xlane.xlu0 %812 }
 0x19f   : > { %v826_v49 = vsub.f32 %v1788_v40, %v1795_v45  ;;  %963 = vst.msk [vmem:[#allocation3] sm:$0xff] %vm482_vm8, %v1795_v45  ;;  %v1805_v50 = vmax.f32 %v1798_v47, %v813_v48 }
 0x1a0   : > { %v811_v55 = vpop.xlane.xlu1 %810 }
 0x1a1   : > { %v831_v56 = vsub.f32 %v1798_v47, %v1805_v50  ;;  %968 = vst.msk [vmem:[#allocation3 + $0x28] sm:$0xff] %vm482_vm8, %v1805_v50  ;;  %v1814_v58 = vmax.f32 %v1807_v53, %v811_v55  ;;  %893 = vperm.xlu1 %1309, %v1805_v50  }
 0x1a2   : > { %v809_v61 = vpop.xlane.xlu0 %808 }
 0x1a3   : > { %v830_v62 = vsub.f32 %v1807_v53, %v1814_v58  ;;  %967 = vst.msk [vmem:[#allocation3 + $0x20] sm:$0xff] %vm482_vm8, %v1814_v58  ;;  %v1824_v0 = vmax.f32 %v1817_v60, %v809_v61  ;;  %888 = vperm.xlu0 %1308, %v1814_v58  }
 0x1a4   : > { %v807_v2 = vpop.xlane.xlu1 %806 }
 0x1a5   : > { %v829_v6 = vsub.f32 %v1817_v60, %v1824_v0  ;;  %966 = vst.msk [vmem:[#allocation3 + $0x18] sm:$0xff] %vm482_vm8, %v1824_v0  ;;  %v1834_v8 = vmax.f32 %v1827_v1, %v807_v2  ;;  %868 = vperm.xlu1 %1309, %v1795_v45  }
 0x1a6   : > { %v817_v4 = vpop.xlane.xlu0 %816 }
 0x1a7   : > { %v828_v11 = vsub.f32 %v1827_v1, %v1834_v8  ;;  %965 = vst.msk [vmem:[#allocation3 + $0x10] sm:$0xff] %vm482_vm8, %v1834_v8  ;;  %v1844_v15 = vmax.f32 %v1837_v9, %v817_v4  ;;  %v840_v35 = vmul.f32 1.442695, %v829_v6 }
 0x1a8   : > { %v815_v20 = vpop.xlane.xlu1 %814 }
 0x1a9   : > { %v833_v18 = vsub.f32 %v1837_v9, %v1844_v15  ;;  %970 = vst.msk [vmem:[#allocation3 + $0x38] sm:$0xff] %vm482_vm8, %v1844_v15  ;;  %v1853_v23 = vmax.f32 %v1846_v19, %v815_v20  ;;  %883 = vperm.xlu1 %1309, %v1824_v0   ;;  %v838_v39 = vmul.f32 1.442695, %v828_v11 }
 0x1aa   : > { %v389_v26 = vpop.xlane.xlu0 %388 }
 0x1ab   : > { %v832_v27 = vsub.f32 %v1846_v19, %v1853_v23  ;;  %969 = vst.msk [vmem:[#allocation3 + $0x30] sm:$0xff] %vm482_vm8, %v1853_v23  ;;  %500 = vst.msk [vmem:[#allocation4 + $0x8] sm:$0xff] %vm482_vm8, %v389_v26  ;;  %898 = vperm.xlu0 %1308, %v1853_v23   ;;  %v848_v53 = vmul.f32 1.442695, %v833_v18 }
 0x1ac   : > { %v386_v28 = vpop.xlane.xlu1 %385 }
 0x1ad   : > { %499 = vst.msk [vmem:[#allocation4] sm:$0xff] %vm482_vm8, %v386_v28  ;;  %878 = vperm.xlu1 %1309, %v1834_v8  }
 0x1ae   : > { %v395_v29 = vpop.xlane.xlu0 %394 }
 0x1af   : > { %502 = vst.msk [vmem:[#allocation4 + $0x18] sm:$0xff] %vm482_vm8, %v395_v29  ;;  %419 = vperm.xlu0 %1308, %v1497_v14  }
 0x1b0   : > { %v392_v30 = vpop.xlane.xlu1 %391 }
 0x1b1   : > { %501 = vst.msk [vmem:[#allocation4 + $0x10] sm:$0xff] %vm482_vm8, %v392_v30  ;;  %903 = vperm.xlu1 %1309, %v1844_v15  }
 0x1b2   : > { %v401_v31 = vpop.xlane.xlu0 %400  ;;  %v851_v47 = vld [vmem:[#allocation4 + $0x8] sm:$0xff] }
 0x1b3   : > { %504 = vst.msk [vmem:[#allocation4 + $0x28] sm:$0xff] %vm482_vm8, %v401_v31  ;;  %425 = vperm.xlu0 %1308, %v1490_v13  }
 0x1b4   : > { %v398_v32 = vpop.xlane.xlu1 %397  ;;  %v850_v6 = vld [vmem:[#allocation4] sm:$0xff] }
 0x1b5   : > { %503 = vst.msk [vmem:[#allocation4 + $0x20] sm:$0xff] %vm482_vm8, %v398_v32  ;;  %422 = vperm.xlu1 %1309, %v1512_v17  }
 0x1b6   : > { %v407_v34 = vpop.xlane.xlu0 %406  ;;  %v853_v18 = vld [vmem:[#allocation4 + $0x18] sm:$0xff] }
 0x1b7   : > { %506 = vst.msk [vmem:[#allocation4 + $0x38] sm:$0xff] %vm482_vm8, %v407_v34  ;;  %431 = vperm.xlu0 %1308, %v1529_v22  }
 0x1b8   : > { %v404_v14 = vpop.xlane.xlu1 %403 }
 0x1b9   : > { %505 = vst.msk [vmem:[#allocation4 + $0x30] sm:$0xff] %vm482_vm8, %v404_v14  ;;  %428 = vperm.xlu1 %1309, %v1509_v16  }
 0x1bb   : > { %437 = vperm.xlu0 %1308, %v1544_v25  }
 0x1bc   : > { %v854_v60 = vld [vmem:[#allocation4 + $0x20] sm:$0xff] }
 0x1bd   : > { %434 = vperm.xlu1 %1309, %v1526_v21  }
 0x1c1   : > { %440 = vperm.xlu1 %1309, %v1541_v24  }
 0x218   : > { %v874_v13 = vpop.permute.xlu0 %873 }
 0x219   : > { %v907_v38 = vsub.f32 %v1727_v52, %v874_v13  ;;  %v409_v13 = vand.u32 127, %v408_v57 }
 0x21b   : > { %v916_v17 = vmul.f32 1.442695, %v907_v38 }
 0x21c   : > { %v894_v42 = vpop.permute.xlu1 %893 }
 0x21d   : > { %1326 = vpow2.f32 %v916_v17  ;;  %v911_v48 = vsub.f32 %v1748_v63, %v894_v42 }
 0x21e   : > { %v889_v22 = vpop.permute.xlu0 %888 }
 0x21f   : > { %v924_v55 = vmul.f32 1.442695, %v911_v48  ;;  %v910_v61 = vsub.f32 %v1754_v5, %v889_v22 }
 0x220   : > { %v869_v2 = vpop.permute.xlu1 %868 }
 0x221   : > { %1328 = vpow2.f32 %v924_v55  ;;  %v922_v16 = vmul.f32 1.442695, %v910_v61  ;;  %v906_v25 = vsub.f32 %v1739_v59, %v869_v2 }
 0x223   : > { %1330 = vpow2.f32 %v922_v16  ;;  %v914_v21 = vmul.f32 1.442695, %v906_v25 }
 0x224   : > { %v884_v24 = vpop.permute.xlu1 %883 }
 0x225   : > { %1332 = vpow2.f32 %v914_v21  ;;  %v909_v52 = vsub.f32 %v1759_v3, %v884_v24 }
 0x226   : > { %v899_v4 = vpop.permute.xlu0 %898 }
 0x227   : > { %v920_v20 = vmul.f32 1.442695, %v909_v52  ;;  %v912_v26 = vsub.f32 %v1772_v12, %v899_v4 }
 0x228   : > { %v879_v63 = vpop.permute.xlu1 %878 }
 0x229   : > { %1334 = vpow2.f32 %v920_v20  ;;  %v926_v28 = vmul.f32 1.442695, %v912_v26  ;;  %v908_v5 = vsub.f32 %v1764_v7, %v879_v63 }
 0x22a   : > { %v1327_v29 = vpop.eup %1326  ;;  %v420_v31 = vpop.permute.xlu0 %419 }
 0x22b   : > { %1336 = vpow2.f32 %v926_v28  ;;  %v918_v30 = vmul.f32 1.442695, %v908_v5  ;;  %932 = vadd.xlane.f32.xlu1 %v1327_v29  ;;  %vm442_vm7 = vcmp.eq.s32.totalorder %v409_v13, %v420_v31  ;;  %v842_v29 = vmul.f32 1.442695, %v830_v62 }
 0x22c   : > { %v904_v59 = vpop.permute.xlu1 %903 }
 0x22d   : > { %1338 = vpow2.f32 %v918_v30  ;;  %v913_v32 = vsub.f32 %v1769_v10, %v904_v59  ;;  %v450_v10 = vsel %vm442_vm7, %v1604_v33, 0.0 }
 0x22e   : > { %v1329_v34 = vpop.eup %1328  ;;  %v426_v38 = vpop.permute.xlu0 %425  ;;  %v458_v61 = vsel %vm335_vm1, %v450_v10, 0.0 }
 0x22f   : > { %v928_v3 = vmul.f32 1.442695, %v913_v32  ;;  %940 = vadd.xlane.f32.xlu0 %v1329_v34  ;;  %vm444_vm4 = vcmp.eq.s32.totalorder %v409_v13, %v426_v38  ;;  %v856_v32 = vld [vmem:[#allocation4 + $0x30] sm:$0xff] }
 0x230   : > { %v1331_v14 = vpop.eup %1330  ;;  %v423_v7 = vpop.permute.xlu1 %422  ;;  %v452_v57 = vsel %vm444_vm4, %v1616_v36, 0.0 }
 0x231   : > { %1340 = vpow2.f32 %v928_v3  ;;  %938 = vadd.xlane.f32.xlu1 %v1331_v14  ;;  %vm443_vm5 = vcmp.eq.s32.totalorder %v409_v13, %v423_v7  ;;  %v464_v24 = vsel %vm335_vm1, %v452_v57, 0.0 }
 0x232   : > { %v1333_v12 = vpop.eup %1332  ;;  %v432_v48 = vpop.permute.xlu0 %431  ;;  %v451_v21 = vsel %vm443_vm5, %v1621_v37, 0.0 }
 0x233   : > { %930 = vadd.xlane.f32.xlu0 %v1333_v12  ;;  %vm446_vm2 = vcmp.eq.s32.totalorder %v409_v13, %v432_v48  ;;  %v461_v52 = vsel %vm335_vm1, %v451_v21, 0.0 }
 0x234   : > { %v429_v22 = vpop.permute.xlu1 %428  ;;  %v454_v33 = vsel %vm446_vm2, %v1640_v43, 0.0 }
 0x235   : > { %vm445_vm10 = vcmp.eq.s32.totalorder %v409_v13, %v429_v22  ;;  %v470_v36 = vsel %vm335_vm1, %v454_v33, 0.0 }
 0x236   : > { %v1335_v17 = vpop.eup %1334  ;;  %v438_v16 = vpop.permute.xlu0 %437  ;;  %v453_v4 = vsel %vm445_vm10, %v1633_v41, 0.0 }
 0x237   : > { %936 = vadd.xlane.f32.xlu0 %v1335_v17  ;;  %vm448_vm3 = vcmp.eq.s32.totalorder %v409_v13, %v438_v16  ;;  %v467_v37 = vsel %vm335_vm1, %v453_v4, 0.0 }
 0x238   : > { %v1337_v42 = vpop.eup %1336  ;;  %v435_v25 = vpop.permute.xlu1 %434  ;;  %v456_v26 = vsel %vm448_vm3, %v1654_v51, 0.0  ;;  %v836_v51 = vmul.f32 1.442695, %v827_v44  ;;  %v846_v44 = vmul.f32 1.442695, %v832_v27 }
 0x239   : > { %942 = vadd.xlane.f32.xlu1 %v1337_v42  ;;  %vm447_vm15 = vcmp.eq.s32.totalorder %v409_v13, %v435_v25  ;;  %v476_v43 = vsel %vm335_vm1, %v456_v26, 0.0 }
 0x23a   : > { %v1339_v55 = vpop.eup %1338  ;;  %v455_v63 = vsel %vm447_vm15, %v1645_v46, 0.0  ;;  %1342 = vpow2.f32 %v836_v51  ;;  %v844_v46 = vmul.f32 1.442695, %v831_v56  ;;  %v975_v51 = vld [vmem:[#allocation3 + $0x8] sm:$0xff] }
 0x23b   : > { %934 = vadd.xlane.f32.xlu0 %v1339_v55  ;;  %v473_v28 = vsel %vm335_vm1, %v455_v63, 0.0 }
 0x23c   : > { %v441_v20 = vpop.permute.xlu1 %440  ;;  %1344 = vpow2.f32 %v844_v46 }
 0x23d   : > { %459 = vadd.xlane.f32.xlu1 %v458_v61  ;;  %vm449_vm9 = vcmp.eq.s32.totalorder %v409_v13, %v441_v20  ;;  %1346 = vpow2.f32 %v842_v29  ;;  %v852_v13 = vld [vmem:[#allocation4 + $0x10] sm:$0xff]  ;;  %v857_v61 = vld [vmem:[#allocation4 + $0x38] sm:$0xff] }
 0x23e   : > { %v1341_v2 = vpop.eup %1340  ;;  %v457_v41 = vsel %vm449_vm9, %v1659_v54, 0.0  ;;  %v834_v54 = vmul.f32 1.442695, %v826_v49  ;;  %v855_v49 = vld [vmem:[#allocation4 + $0x28] sm:$0xff] }
 0x23f   : > { %944 = vadd.xlane.f32.xlu0 %v1341_v2  ;;  %v479_v5 = vsel %vm335_vm1, %v457_v41, 0.0 }
 0x240   : > { %1348 = vpow2.f32 %v834_v54 }
 0x241   : > { %465 = vadd.xlane.f32.xlu1 %v464_v24  ;;  %1350 = vpow2.f32 %v840_v35 }
 0x242   : > { %1352 = vpow2.f32 %v838_v39 }
 0x243   : > { %462 = vadd.xlane.f32.xlu0 %v461_v52  ;;  %1354 = vpow2.f32 %v846_v44 }
 0x244   : > { %1356 = vpow2.f32 %v848_v53  ;;  %v974_v53 = vld [vmem:[#allocation3] sm:$0xff] }
 0x245   : > { %471 = vadd.xlane.f32.xlu1 %v470_v36 }
 0x247   : > { %468 = vadd.xlane.f32.xlu0 %v467_v37  ;;  %v1343_v50 = vpop.eup %1342 }
 0x248   : > { %v859_v40 = vmul.f32 %v1343_v50, %v851_v47  ;;  %v978_v47 = vld [vmem:[#allocation3 + $0x20] sm:$0xff] }
 0x249   : > { %477 = vadd.xlane.f32.xlu1 %v476_v43  ;;  %v1345_v58 = vpop.eup %1344 }
 0x24a   : > { %v863_v62 = vmul.f32 %v1345_v58, %v855_v49  ;;  %v1347_v0 = vpop.eup %1346 }
 0x24b   : > { %474 = vadd.xlane.f32.xlu0 %v473_v28  ;;  %v862_v11 = vmul.f32 %v1347_v0, %v854_v60 }
 0x24d   : > { %v1349_v19 = vpop.eup %1348 }
 0x24e   : > { %v858_v30 = vmul.f32 %v1349_v19, %v850_v6  ;;  %v1351_v9 = vpop.eup %1350 }
 0x24f   : > { %480 = vadd.xlane.f32.xlu0 %v479_v5  ;;  %v1353_v34 = vpop.eup %1352  ;;  %v861_v3 = vmul.f32 %v1351_v9, %v853_v18 }
 0x250   : > { %v1355_v14 = vpop.eup %1354  ;;  %v860_v22 = vmul.f32 %v1353_v34, %v852_v13  ;;  %v976_v13 = vld [vmem:[#allocation3 + $0x10] sm:$0xff] }
 0x251   : > { %v864_v7 = vmul.f32 %v1355_v14, %v856_v32  ;;  %v1357_v2 = vpop.eup %1356 }
 0x252   : > { %v865_v21 = vmul.f32 %v1357_v2, %v857_v61 }
 0x2b4   : > { %v933_v45 = vpop.xlane.xlu1 %932 }
 0x2b5   : > { %v947_v56 = vadd.f32 %v933_v45, %v859_v40 }
 0x2b7   : > { %956 = vst.msk [vmem:[#allocation4 + $0x8] sm:$0xff] %vm482_vm8, %v947_v56 }
 0x2b8   : > { %v941_v1 = vpop.xlane.xlu0 %940 }
 0x2b9   : > { %v951_v8 = vadd.f32 %v941_v1, %v863_v62 }
 0x2ba   : > { %v939_v23 = vpop.xlane.xlu1 %938 }
 0x2bb   : > { %960 = vst.msk [vmem:[#allocation4 + $0x28] sm:$0xff] %vm482_vm8, %v951_v8  ;;  %v950_v27 = vadd.f32 %v939_v23, %v862_v11  ;;  %v977_v23 = vld [vmem:[#allocation3 + $0x18] sm:$0xff] }
 0x2bc   : > { %v931_v15 = vpop.xlane.xlu0 %930 }
 0x2bd   : > { %959 = vst.msk [vmem:[#allocation4 + $0x20] sm:$0xff] %vm482_vm8, %v950_v27  ;;  %v946_v59 = vadd.f32 %v931_v15, %v858_v30  ;;  %v979_v27 = vld [vmem:[#allocation3 + $0x28] sm:$0xff] }
 0x2be   : > { %v983_v31 = vld [vmem:[#allocation4 + $0x8] sm:$0xff] }
 0x2bf   : > { %1358 = vlog2.f32 %v983_v31  ;;  %955 = vst.msk [vmem:[#allocation4] sm:$0xff] %vm482_vm8, %v946_v59  ;;  %v980_v31 = vld [vmem:[#allocation3 + $0x30] sm:$0xff] }
 0x2c0   : > { %v937_v12 = vpop.xlane.xlu0 %936 }
 0x2c1   : > { %v949_v38 = vadd.f32 %v937_v12, %v861_v3 }
 0x2c2   : > { %v943_v17 = vpop.xlane.xlu1 %942  ;;  %v987_v42 = vld [vmem:[#allocation4 + $0x28] sm:$0xff] }
 0x2c3   : > { %958 = vst.msk [vmem:[#allocation4 + $0x18] sm:$0xff] %vm482_vm8, %v949_v38  ;;  %v952_v48 = vadd.f32 %v943_v17, %v864_v7 }
 0x2c4   : > { %v986_v10 = vld [vmem:[#allocation4 + $0x20] sm:$0xff]  ;;  %v935_v55 = vpop.xlane.xlu0 %934 }
 0x2c5   : > { %1360 = vlog2.f32 %v986_v10  ;;  %961 = vst.msk [vmem:[#allocation4 + $0x30] sm:$0xff] %vm482_vm8, %v952_v48  ;;  %v948_v57 = vadd.f32 %v935_v55, %v860_v22  ;;  %v981_v55 = vld [vmem:[#allocation3 + $0x38] sm:$0xff] }
 0x2c6   : > { %1362 = vlog2.f32 %v987_v42  ;;  %v982_v16 = vld [vmem:[#allocation4] sm:$0xff]  ;;  %v460_v25 = vpop.xlane.xlu1 %459 }
 0x2c7   : > { %1364 = vlog2.f32 %v982_v16  ;;  %957 = vst.msk [vmem:[#allocation4 + $0x10] sm:$0xff] %vm482_vm8, %v948_v57  ;;  %483 = vst.msk [vmem:[#allocation5] sm:$0xff] %vm482_vm8, %v460_v25 }
 0x2c8   : > { %v945_v24 = vpop.xlane.xlu0 %944 }
 0x2c9   : > { %v953_v33 = vadd.f32 %v945_v24, %v865_v21 }
 0x2ca   : > { %v985_v52 = vld [vmem:[#allocation4 + $0x18] sm:$0xff]  ;;  %v466_v4 = vpop.xlane.xlu1 %465 }
 0x2cb   : > { %1366 = vlog2.f32 %v985_v52  ;;  %962 = vst.msk [vmem:[#allocation4 + $0x38] sm:$0xff] %vm482_vm8, %v953_v33  ;;  %485 = vst.msk [vmem:[#allocation5 + $0x10] sm:$0xff] %vm482_vm8, %v466_v4 }
 0x2cc   : > { %v1359_v36 = vpop.eup %1358  ;;  %v988_v20 = vld [vmem:[#allocation4 + $0x30] sm:$0xff]  ;;  %v463_v26 = vpop.xlane.xlu0 %462 }
 0x2cd   : > { %1368 = vlog2.f32 %v988_v20  ;;  %484 = vst.msk [vmem:[#allocation5 + $0x8] sm:$0xff] %vm482_vm8, %v463_v26  ;;  %v993_v43 = vmul.f32 0.6931472, %v1359_v36 }
 0x2ce   : > { %v984_v37 = vld [vmem:[#allocation4 + $0x10] sm:$0xff]  ;;  %v472_v63 = vpop.xlane.xlu1 %471  ;;  %v1014_v1 = vld [vmem:[#allocation5] sm:$0xff] }
 0x2cf   : > { %1370 = vlog2.f32 %v984_v37  ;;  %487 = vst.msk [vmem:[#allocation5 + $0x20] sm:$0xff] %vm482_vm8, %v472_v63  ;;  %v1007_v54 = vadd.f32 %v993_v43, %v975_v51 }
 0x2d0   : > { %v469_v28 = vpop.xlane.xlu0 %468 }
 0x2d1   : > { %486 = vst.msk [vmem:[#allocation5 + $0x18] sm:$0xff] %vm482_vm8, %v469_v28 }
 0x2d2   : > { %v1361_v41 = vpop.eup %1360  ;;  %v989_v5 = vld [vmem:[#allocation4 + $0x38] sm:$0xff]  ;;  %v478_v46 = vpop.xlane.xlu1 %477  ;;  %v1016_v48 = vld [vmem:[#allocation5 + $0x10] sm:$0xff] }
 0x2d3   : > { %v1363_v29 = vpop.eup %1362  ;;  %1372 = vlog2.f32 %v989_v5  ;;  %v999_v35 = vmul.f32 0.6931472, %v1361_v41  ;;  %489 = vst.msk [vmem:[#allocation5 + $0x30] sm:$0xff] %vm482_vm8, %v478_v46 }
 0x2d4   : > { %v1365_v39 = vpop.eup %1364  ;;  %v1015_v44 = vld [vmem:[#allocation5 + $0x8] sm:$0xff]  ;;  %v475_v50 = vpop.xlane.xlu0 %474  ;;  %v1001_v62 = vmul.f32 0.6931472, %v1363_v29 }
 0x2d5   : > { %v991_v40 = vmul.f32 0.6931472, %v1365_v39  ;;  %v1023_v45 = vsub.f32 %v1007_v54, %v1015_v44  ;;  %v1010_v49 = vadd.f32 %v999_v35, %v978_v47  ;;  %488 = vst.msk [vmem:[#allocation5 + $0x28] sm:$0xff] %vm482_vm8, %v475_v50 }
 0x2d6   : > { %v1018_v56 = vld [vmem:[#allocation5 + $0x20] sm:$0xff]  ;;  %v1011_v15 = vadd.f32 %v1001_v62, %v979_v27 }
 0x2d7   : > { %v1006_v58 = vadd.f32 %v991_v40, %v974_v53  ;;  %1031 = vst.msk [vmem:[%s1946_s26 + $0x8] sm:$0xff] %vm482_vm8, %v1023_v45  ;;  %v1026_v60 = vsub.f32 %v1010_v49, %v1018_v56 }
 0x2d8   : > { %v1367_v0 = vpop.eup %1366  ;;  %v481_v6 = vpop.xlane.xlu0 %480  ;;  %v1017_v59 = vld [vmem:[#allocation5 + $0x18] sm:$0xff] }
 0x2d9   : > { %v1022_v8 = vsub.f32 %v1006_v58, %v1014_v1  ;;  %1034 = vst.msk [vmem:[%s1946_s26 + $0x20] sm:$0xff] %vm482_vm8, %v1026_v60  ;;  %v997_v11 = vmul.f32 0.6931472, %v1367_v0  ;;  %490 = vst.msk [vmem:[#allocation5 + $0x38] sm:$0xff] %vm482_vm8, %v481_v6 }
 0x2da   : > { %v1369_v19 = vpop.eup %1368  ;;  %v1020_v38 = vld [vmem:[#allocation5 + $0x30] sm:$0xff] }
 0x2db   : > { %1030 = vst.msk [vmem:[%s1946_s26] sm:$0xff] %vm482_vm8, %v1022_v8  ;;  %v1009_v30 = vadd.f32 %v997_v11, %v977_v23  ;;  %v1003_v9 = vmul.f32 0.6931472, %v1369_v19 }
 0x2dc   : > { %v1371_v18 = vpop.eup %1370  ;;  %v1019_v32 = vld [vmem:[#allocation5 + $0x28] sm:$0xff] }
 0x2dd   : > { %v995_v34 = vmul.f32 0.6931472, %v1371_v18  ;;  %v1025_v3 = vsub.f32 %v1009_v30, %v1017_v59  ;;  %v1012_v14 = vadd.f32 %v1003_v9, %v980_v31  ;;  %v1027_v12 = vsub.f32 %v1011_v15, %v1019_v32 }
 0x2df   : > { %v1008_v7 = vadd.f32 %v995_v34, %v976_v13  ;;  %1033 = vst.msk [vmem:[%s1946_s26 + $0x18] sm:$0xff] %vm482_vm8, %v1025_v3  ;;  %v1028_v17 = vsub.f32 %v1012_v14, %v1020_v38  ;;  %1035 = vst.msk [vmem:[%s1946_s26 + $0x28] sm:$0xff] %vm482_vm8, %v1027_v12 }
 0x2e0   : > { %v1373_v42 = vpop.eup %1372  ;;  %v1021_v57 = vld [vmem:[#allocation5 + $0x38] sm:$0xff] }
 0x2e1   : > { %v1024_v22 = vsub.f32 %v1008_v7, %v1016_v48  ;;  %1036 = vst.msk [vmem:[%s1946_s26 + $0x30] sm:$0xff] %vm482_vm8, %v1028_v17  ;;  %v1005_v10 = vmul.f32 0.6931472, %v1373_v42 }
 0x2e3   : > { %1032 = vst.msk [vmem:[%s1946_s26 + $0x10] sm:$0xff] %vm482_vm8, %v1024_v22  ;;  %v1013_v61 = vadd.f32 %v1005_v10, %v981_v55 }
 0x2e5   : > { %v1029_v2 = vsub.f32 %v1013_v61, %v1021_v57 }
 0x2e7   : > { %1037 = vst.msk [vmem:[%s1946_s26 + $0x38] sm:$0xff] %vm482_vm8, %v1029_v2 }
 0x2e8 PF: > { %s15_s20 = sadd.s32 1, %s1396_s20   ;;  %s1999_s18 = smov %s1392_s19 }
 0x2e9   : > { %p12_p5 = scmp.ge.s32.totalorder %s15_s20, 4   ;;  %s2000_s19 = smov %s2002_s21 }
 0x2eb   :  { %14 = sbr.rel (!%p12_p5) target bundleno = 2 (0x2), region = 88 }

</bundles_post_ra>
